<compile_context>
chip_gen: v6e
topology: v6e:2x2x1
jax: 0.10.0
libtpu: 0.0.40
codegen_flags: <defaults>
</compile_context>

<pallas_src>
import functools

import numpy as np
import jax
import jax.numpy as jnp
from jax.experimental import pallas as pl
from jax.experimental.pallas import tpu as pltpu
from jax.scipy.ndimage import map_coordinates


def _round_up(x, m):
    return (x + m - 1) // m * m


# ---------------------------------------------------------------------------
# Kernel 1: warp coordinates -> base corner index + 6 masked axis weights
# ---------------------------------------------------------------------------
def _warp_kernel(flow_ref, base_ref, w6_ref, *, D, H, W, td, thw):
    # flow_ref: (1, 3, td, thw) f32   flow for this (batch, d-tile, hw-tile)
    # base_ref: (1, td, thw)    int32 linear index of the floor corner (z0,y0,x0)
    # w6_ref  : (1, 6, td, thw) f32   [wz0, wz1, wy0, wy1, wx0, wx1]
    HW = H * W

    # Identity grid generated in-kernel (no HBM grid stream).
    d_idx = jax.lax.broadcasted_iota(jnp.int32, (td, thw), 0) + pl.program_id(1) * td
    hw_idx = jax.lax.broadcasted_iota(jnp.int32, (td, thw), 1) + pl.program_id(2) * thw
    # Decompose hw -> (h, w).  Exact while H*W < 2^22 (asserted in the wrapper):
    # (hw + 0.5)/W stays >= 0.5/W away from any integer, far above f32 rounding.
    h_idx = jnp.floor((hw_idx.astype(jnp.float32) + 0.5) * (1.0 / W)).astype(jnp.int32)
    w_idx = hw_idx - h_idx * W
    valid = (hw_idx < HW).astype(jnp.float32)   # mask lanes padding H*W up to thw mult.

    flow = flow_ref[0]                          # (3, td, thw) f32
    cz = d_idx.astype(jnp.float32) + flow[0]
    cy = h_idx.astype(jnp.float32) + flow[1]
    cx = w_idx.astype(jnp.float32) + flow[2]

    fz = jnp.floor(cz)
    fy = jnp.floor(cy)
    fx = jnp.floor(cx)
    tz = cz - fz
    ty = cy - fy
    tx = cx - fx
    z0 = fz.astype(jnp.int32)
    y0 = fy.astype(jnp.int32)
    x0 = fx.astype(jnp.int32)

    def axis_weights(t, i0, size):
        # zeros-padding: a corner outside [0, size-1] contributes 0.
        w_lo = jnp.where((i0 >= 0) & (i0 <= size - 1), 1.0 - t, 0.0)
        w_hi = jnp.where((i0 + 1 >= 0) & (i0 + 1 <= size - 1), t, 0.0)
        return w_lo, w_hi

    wz0, wz1 = axis_weights(tz, z0, D)
    wy0, wy1 = axis_weights(ty, y0, H)
    wx0, wx1 = axis_weights(tx, x0, W)

    # Base corner linear index.  Each axis is clamped to [-1, size-1] so that
    # base + the static corner offsets stays bounded; the consumer does one final
    # clip to [0, N-1].  OOB corners already carry zero weight, so the clamped
    # index value is never actually used.
    base = (jnp.clip(z0, -1, D - 1) * HW
            + jnp.clip(y0, -1, H - 1) * W
            + jnp.clip(x0, -1, W - 1))

    base_ref[0] = base
    w6_ref[0, 0] = wz0 * valid   # fold hw-padding mask into the z weights only
    w6_ref[0, 1] = wz1 * valid
    w6_ref[0, 2] = wy0
    w6_ref[0, 3] = wy1
    w6_ref[0, 4] = wx0
    w6_ref[0, 5] = wx1


# ---------------------------------------------------------------------------
# Kernel 2: reconstruct 8 trilinear weights + unrolled 8-corner FMA blend
# ---------------------------------------------------------------------------
def _blend_kernel(vals_ref, w6_ref, out_ref):
    # vals_ref: (1, C*8, td, thw) src-dtype gathered corner values (row = c*8 + k)
    # w6_ref  : (1, 6, td, thw)   f32 axis weights
    # out_ref : (1, C, td, thw)   src dtype
    C = out_ref.shape[1]
    w6 = w6_ref[0]                               # (6, td, thw)

    wk = []
    for dz in (0, 1):
        for dy in (0, 1):
            for dx in (0, 1):
                wk.append(w6[dz] * w6[2 + dy] * w6[4 + dx])

    for c in range(C):
        acc = vals_ref[0, c * 8 + 0].astype(jnp.float32) * wk[0]
        for k in range(1, 8):
            acc = acc + vals_ref[0, c * 8 + k].astype(jnp.float32) * wk[k]
        out_ref[0, c] = acc.astype(out_ref.dtype)


# ---------------------------------------------------------------------------
# Wrapper: SpatialTransformer.forward (3-D, bilinear, align_corners=True)
# ---------------------------------------------------------------------------
def spatial_transformer_3d(src, flow, *, block_hw=2048):
    B, C, D, H, W = src.shape
    assert flow.shape == (B, 3, D, H, W), flow.shape
    HW = H * W
    N = D * HW
    assert HW < (1 << 22), "H*W too large for the in-kernel index decomposition"
    assert N < (1 << 30), "int32 linear indices would overflow"

    # Lane tile over the flattened H*W plane (multiple of 128); sublane tile of 8
    # over D when divisible (full vregs), otherwise the whole D axis.
    thw = _round_up(min(block_hw, _round_up(HW, 128)), 128)
    HWp = _round_up(HW, thw)
    td = 8 if D % 8 == 0 else D
    grid = (B, D // td, HWp // thw)
    cparams = pltpu.CompilerParams(
        dimension_semantics=("parallel", "parallel", "parallel"),
        vmem_limit_bytes=48 * 1024 * 1024)   # > v5e/v6e scoped defaults, < v7x 64 MiB

    flow_p = flow.astype(jnp.float32).reshape(B, 3, D, HW)
    flow_p = jnp.pad(flow_p, ((0, 0), (0, 0), (0, 0), (0, HWp - HW)))

    warp = functools.partial(_warp_kernel, D=D, H=H, W=W, td=td, thw=thw)
    base, w6 = pl.pallas_call(
        warp,
        out_shape=(jax.ShapeDtypeStruct((B, D, HWp), jnp.int32),
                   jax.ShapeDtypeStruct((B, 6, D, HWp), jnp.float32)),
        grid=grid,
        in_specs=[pl.BlockSpec((1, 3, td, thw), lambda b, i, j: (b, 0, i, j))],
        out_specs=(pl.BlockSpec((1, td, thw), lambda b, i, j: (b, i, j)),
                   pl.BlockSpec((1, 6, td, thw), lambda b, i, j: (b, 0, i, j))),
        compiler_params=cparams,
    )(flow_p)

    # XLA gather of the 8 corner values per voxel, in src's native dtype.
    # Reconstruct the 8 indices from the base index with static strides.
    offs = jnp.array([0, 1, W, W + 1, HW, HW + 1, HW + W, HW + W + 1], jnp.int32)
    idx8 = jnp.clip(base[:, None] + offs[None, :, None, None], 0, N - 1)  # (B,8,D,HWp)
    src_flat = src.reshape(B, C, N)
    vals = jax.vmap(lambda s, i: jnp.take(s, i, axis=1))(
        src_flat, idx8.reshape(B, -1))           # (B, C, 8*D*HWp)
    vals = vals.reshape(B, C * 8, D, HWp)        # row index = c*8 + k

    out = pl.pallas_call(
        _blend_kernel,
        out_shape=jax.ShapeDtypeStruct((B, C, D, HWp), src.dtype),
        grid=grid,
        in_specs=[pl.BlockSpec((1, C * 8, td, thw), lambda b, i, j: (b, 0, i, j)),
                  pl.BlockSpec((1, 6, td, thw), lambda b, i, j: (b, 0, i, j))],
        out_specs=pl.BlockSpec((1, C, td, thw), lambda b, i, j: (b, 0, i, j)),
        compiler_params=cparams,
    )(vals, w6)

    return out[..., :HW].reshape(B, C, D, H, W)


# ---------------------------------------------------------------------------
# Pure-JAX reference (grid_sample zeros-padding == linear map_coordinates, cval=0)
# ---------------------------------------------------------------------------
def _reference(src, flow):
    B, C, D, H, W = src.shape
    gd, gh, gw = jnp.meshgrid(jnp.arange(D, dtype=jnp.float32),
                              jnp.arange(H, dtype=jnp.float32),
                              jnp.arange(W, dtype=jnp.float32), indexing="ij")
    coords = jnp.stack([gd, gh, gw])[None] + flow.astype(jnp.float32)  # (B,3,D,H,W)

    def sample_one(vol, coord3):
        return map_coordinates(vol, [coord3[i] for i in range(3)],
                               order=1, mode="constant", cval=0.0)

    def per_batch(src_b, coord_b):
        return jax.vmap(lambda v: sample_one(v, coord_b))(src_b)

    return jax.vmap(per_batch)(src, coords)


# ---------------------------------------------------------------------------
if __name__ == "__main__":
    B, C, D, H, W = 2, 4, 8, 8, 8
    key = jax.random.PRNGKey(0)
    k_src, k_flow = jax.random.split(key)
    src = jax.random.normal(k_src, (B, C, D, H, W), jnp.float32)
    flow = 2.0 * jax.random.normal(k_flow, (B, 3, D, H, W), jnp.float32)

    out = jax.jit(spatial_transformer_3d)(src, flow)
    out = jax.block_until_ready(out)

    assert out.shape == (B, C, D, H, W), out.shape
    assert out.dtype == src.dtype
    assert bool(jnp.all(jnp.isfinite(out)))

    ref = _reference(src, flow)
    max_err = float(jnp.max(jnp.abs(out - ref)))
    assert max_err < 1e-3, f"max abs error vs reference: {max_err}"

    print("KERNEL_OK")
</pallas_src>

<mosaic_0001>
module attributes {stable_mosaic.version = 11 : i64} {
  func.func @_warp_kernel(%arg0: i32, %arg1: i32, %arg2: i32, %arg3: memref<1x3x8x128xf32, #tpu.memory_space<vmem>>, %arg4: memref<1x8x128xi32, #tpu.memory_space<vmem>>, %arg5: memref<1x6x8x128xf32, #tpu.memory_space<vmem>>) attributes {dimension_semantics = [#tpu.dimension_semantics<parallel>, #tpu.dimension_semantics<parallel>, #tpu.dimension_semantics<parallel>], iteration_bounds = array<i64: 2, 1, 1>, scalar_prefetch = 0 : i64, scratch_operands = 0 : i64, tpu.core_type = #tpu.core_type<tc>, window_params = [{transform_indices = @transform_0, window_bounds = array<i64: 1, 3, 8, 128>}, {transform_indices = @transform_1, window_bounds = array<i64: 1, 8, 128>}, {transform_indices = @transform_2, window_bounds = array<i64: 1, 6, 8, 128>}]} {
    %0 = tpu.iota {dimensions = array<i32: 0>} : vector<8x128xi32>
    %c8_i32 = arith.constant 8 : i32
    %1 = arith.muli %arg1, %c8_i32 : i32
    %2 = vector.broadcast %1 : i32 to vector<8x128xi32>
    %3 = arith.addi %0, %2 : vector<8x128xi32>
    %4 = tpu.iota {dimensions = array<i32: 1>} : vector<8x128xi32>
    %c128_i32 = arith.constant 128 : i32
    %5 = arith.muli %arg2, %c128_i32 : i32
    %6 = vector.broadcast %5 : i32 to vector<8x128xi32>
    %7 = arith.addi %4, %6 : vector<8x128xi32>
    %8 = arith.sitofp %7 : vector<8x128xi32> to vector<8x128xf32>
    %cst = arith.constant 5.000000e-01 : f32
    %9 = vector.broadcast %cst : f32 to vector<8x128xf32>
    %10 = arith.addf %8, %9 : vector<8x128xf32>
    %cst_0 = arith.constant 1.250000e-01 : f32
    %11 = vector.broadcast %cst_0 : f32 to vector<8x128xf32>
    %12 = arith.mulf %10, %11 : vector<8x128xf32>
    %13 = math.floor %12 : vector<8x128xf32>
    %14 = arith.fptosi %13 : vector<8x128xf32> to vector<8x128xi32>
    %c8_i32_1 = arith.constant 8 : i32
    %15 = vector.broadcast %c8_i32_1 : i32 to vector<8x128xi32>
    %16 = arith.muli %14, %15 : vector<8x128xi32>
    %17 = arith.subi %7, %16 : vector<8x128xi32>
    %c64_i32 = arith.constant 64 : i32
    %18 = vector.broadcast %c64_i32 : i32 to vector<8x128xi32>
    %19 = arith.cmpi slt, %7, %18 : vector<8x128xi32>
    %20 = arith.extui %19 : vector<8x128xi1> to vector<8x128xi32>
    %21 = arith.sitofp %20 : vector<8x128xi32> to vector<8x128xf32>
    %c0 = arith.constant 0 : index
    %c0_2 = arith.constant 0 : index
    %c0_3 = arith.constant 0 : index
    %c0_4 = arith.constant 0 : index
    %22 = vector.load %arg3[%c0, %c0_2, %c0_3, %c0_4] : memref<1x3x8x128xf32, #tpu.memory_space<vmem>>, vector<1x3x8x128xf32>
    %23 = vector.shape_cast %22 : vector<1x3x8x128xf32> to vector<3x8x128xf32>
    %24 = arith.sitofp %3 : vector<8x128xi32> to vector<8x128xf32>
    %25 = vector.extract_strided_slice %23 {offsets = [0, 0, 0], sizes = [1, 8, 128], strides = [1, 1, 1]} : vector<3x8x128xf32> to vector<1x8x128xf32>
    %26 = vector.shape_cast %25 : vector<1x8x128xf32> to vector<8x128xf32>
    %27 = arith.addf %24, %26 : vector<8x128xf32>
    %28 = arith.sitofp %14 : vector<8x128xi32> to vector<8x128xf32>
    %29 = vector.extract_strided_slice %23 {offsets = [1, 0, 0], sizes = [1, 8, 128], strides = [1, 1, 1]} : vector<3x8x128xf32> to vector<1x8x128xf32>
    %30 = vector.shape_cast %29 : vector<1x8x128xf32> to vector<8x128xf32>
    %31 = arith.addf %28, %30 : vector<8x128xf32>
    %32 = arith.sitofp %17 : vector<8x128xi32> to vector<8x128xf32>
    %33 = vector.extract_strided_slice %23 {offsets = [2, 0, 0], sizes = [1, 8, 128], strides = [1, 1, 1]} : vector<3x8x128xf32> to vector<1x8x128xf32>
    %34 = vector.shape_cast %33 : vector<1x8x128xf32> to vector<8x128xf32>
    %35 = arith.addf %32, %34 : vector<8x128xf32>
    %36 = math.floor %27 : vector<8x128xf32>
    %37 = math.floor %31 : vector<8x128xf32>
    %38 = math.floor %35 : vector<8x128xf32>
    %39 = arith.subf %27, %36 : vector<8x128xf32>
    %40 = arith.subf %31, %37 : vector<8x128xf32>
    %41 = arith.subf %35, %38 : vector<8x128xf32>
    %42 = arith.fptosi %36 : vector<8x128xf32> to vector<8x128xi32>
    %43 = arith.fptosi %37 : vector<8x128xf32> to vector<8x128xi32>
    %44 = arith.fptosi %38 : vector<8x128xf32> to vector<8x128xi32>
    %c0_i32 = arith.constant 0 : i32
    %45 = vector.broadcast %c0_i32 : i32 to vector<8x128xi32>
    %46 = arith.cmpi sge, %42, %45 : vector<8x128xi32>
    %c7_i32 = arith.constant 7 : i32
    %47 = vector.broadcast %c7_i32 : i32 to vector<8x128xi32>
    %48 = arith.cmpi sle, %42, %47 : vector<8x128xi32>
    %49 = arith.andi %46, %48 : vector<8x128xi1>
    %cst_5 = arith.constant 1.000000e+00 : f32
    %50 = vector.broadcast %cst_5 : f32 to vector<8x128xf32>
    %51 = arith.subf %50, %39 : vector<8x128xf32>
    %cst_6 = arith.constant 0.000000e+00 : f32
    %52 = vector.broadcast %cst_6 : f32 to vector<8x128xf32>
    %53 = arith.select %49, %51, %52 : vector<8x128xi1>, vector<8x128xf32>
    %c1_i32 = arith.constant 1 : i32
    %54 = vector.broadcast %c1_i32 : i32 to vector<8x128xi32>
    %55 = arith.addi %42, %54 : vector<8x128xi32>
    %c0_i32_7 = arith.constant 0 : i32
    %56 = vector.broadcast %c0_i32_7 : i32 to vector<8x128xi32>
    %57 = arith.cmpi sge, %55, %56 : vector<8x128xi32>
    %c1_i32_8 = arith.constant 1 : i32
    %58 = vector.broadcast %c1_i32_8 : i32 to vector<8x128xi32>
    %59 = arith.addi %42, %58 : vector<8x128xi32>
    %c7_i32_9 = arith.constant 7 : i32
    %60 = vector.broadcast %c7_i32_9 : i32 to vector<8x128xi32>
    %61 = arith.cmpi sle, %59, %60 : vector<8x128xi32>
    %62 = arith.andi %57, %61 : vector<8x128xi1>
    %cst_10 = arith.constant 0.000000e+00 : f32
    %63 = vector.broadcast %cst_10 : f32 to vector<8x128xf32>
    %64 = arith.select %62, %39, %63 : vector<8x128xi1>, vector<8x128xf32>
    %c0_i32_11 = arith.constant 0 : i32
    %65 = vector.broadcast %c0_i32_11 : i32 to vector<8x128xi32>
    %66 = arith.cmpi sge, %43, %65 : vector<8x128xi32>
    %c7_i32_12 = arith.constant 7 : i32
    %67 = vector.broadcast %c7_i32_12 : i32 to vector<8x128xi32>
    %68 = arith.cmpi sle, %43, %67 : vector<8x128xi32>
    %69 = arith.andi %66, %68 : vector<8x128xi1>
    %cst_13 = arith.constant 1.000000e+00 : f32
    %70 = vector.broadcast %cst_13 : f32 to vector<8x128xf32>
    %71 = arith.subf %70, %40 : vector<8x128xf32>
    %cst_14 = arith.constant 0.000000e+00 : f32
    %72 = vector.broadcast %cst_14 : f32 to vector<8x128xf32>
    %73 = arith.select %69, %71, %72 : vector<8x128xi1>, vector<8x128xf32>
    %c1_i32_15 = arith.constant 1 : i32
    %74 = vector.broadcast %c1_i32_15 : i32 to vector<8x128xi32>
    %75 = arith.addi %43, %74 : vector<8x128xi32>
    %c0_i32_16 = arith.constant 0 : i32
    %76 = vector.broadcast %c0_i32_16 : i32 to vector<8x128xi32>
    %77 = arith.cmpi sge, %75, %76 : vector<8x128xi32>
    %c1_i32_17 = arith.constant 1 : i32
    %78 = vector.broadcast %c1_i32_17 : i32 to vector<8x128xi32>
    %79 = arith.addi %43, %78 : vector<8x128xi32>
    %c7_i32_18 = arith.constant 7 : i32
    %80 = vector.broadcast %c7_i32_18 : i32 to vector<8x128xi32>
    %81 = arith.cmpi sle, %79, %80 : vector<8x128xi32>
    %82 = arith.andi %77, %81 : vector<8x128xi1>
    %cst_19 = arith.constant 0.000000e+00 : f32
    %83 = vector.broadcast %cst_19 : f32 to vector<8x128xf32>
    %84 = arith.select %82, %40, %83 : vector<8x128xi1>, vector<8x128xf32>
    %c0_i32_20 = arith.constant 0 : i32
    %85 = vector.broadcast %c0_i32_20 : i32 to vector<8x128xi32>
    %86 = arith.cmpi sge, %44, %85 : vector<8x128xi32>
    %c7_i32_21 = arith.constant 7 : i32
    %87 = vector.broadcast %c7_i32_21 : i32 to vector<8x128xi32>
    %88 = arith.cmpi sle, %44, %87 : vector<8x128xi32>
    %89 = arith.andi %86, %88 : vector<8x128xi1>
    %cst_22 = arith.constant 1.000000e+00 : f32
    %90 = vector.broadcast %cst_22 : f32 to vector<8x128xf32>
    %91 = arith.subf %90, %41 : vector<8x128xf32>
    %cst_23 = arith.constant 0.000000e+00 : f32
    %92 = vector.broadcast %cst_23 : f32 to vector<8x128xf32>
    %93 = arith.select %89, %91, %92 : vector<8x128xi1>, vector<8x128xf32>
    %c1_i32_24 = arith.constant 1 : i32
    %94 = vector.broadcast %c1_i32_24 : i32 to vector<8x128xi32>
    %95 = arith.addi %44, %94 : vector<8x128xi32>
    %c0_i32_25 = arith.constant 0 : i32
    %96 = vector.broadcast %c0_i32_25 : i32 to vector<8x128xi32>
    %97 = arith.cmpi sge, %95, %96 : vector<8x128xi32>
    %c1_i32_26 = arith.constant 1 : i32
    %98 = vector.broadcast %c1_i32_26 : i32 to vector<8x128xi32>
    %99 = arith.addi %44, %98 : vector<8x128xi32>
    %c7_i32_27 = arith.constant 7 : i32
    %100 = vector.broadcast %c7_i32_27 : i32 to vector<8x128xi32>
    %101 = arith.cmpi sle, %99, %100 : vector<8x128xi32>
    %102 = arith.andi %97, %101 : vector<8x128xi1>
    %cst_28 = arith.constant 0.000000e+00 : f32
    %103 = vector.broadcast %cst_28 : f32 to vector<8x128xf32>
    %104 = arith.select %102, %41, %103 : vector<8x128xi1>, vector<8x128xf32>
    %c-1_i32 = arith.constant -1 : i32
    %c7_i32_29 = arith.constant 7 : i32
    %105 = vector.broadcast %c-1_i32 : i32 to vector<8x128xi32>
    %106 = arith.maxsi %105, %42 : vector<8x128xi32>
    %107 = vector.broadcast %c7_i32_29 : i32 to vector<8x128xi32>
    %108 = arith.minsi %107, %106 : vector<8x128xi32>
    %c64_i32_30 = arith.constant 64 : i32
    %109 = vector.broadcast %c64_i32_30 : i32 to vector<8x128xi32>
    %110 = arith.muli %108, %109 : vector<8x128xi32>
    %c-1_i32_31 = arith.constant -1 : i32
    %c7_i32_32 = arith.constant 7 : i32
    %111 = vector.broadcast %c-1_i32_31 : i32 to vector<8x128xi32>
    %112 = arith.maxsi %111, %43 : vector<8x128xi32>
    %113 = vector.broadcast %c7_i32_32 : i32 to vector<8x128xi32>
    %114 = arith.minsi %113, %112 : vector<8x128xi32>
    %c8_i32_33 = arith.constant 8 : i32
    %115 = vector.broadcast %c8_i32_33 : i32 to vector<8x128xi32>
    %116 = arith.muli %114, %115 : vector<8x128xi32>
    %117 = arith.addi %110, %116 : vector<8x128xi32>
    %c-1_i32_34 = arith.constant -1 : i32
    %c7_i32_35 = arith.constant 7 : i32
    %118 = vector.broadcast %c-1_i32_34 : i32 to vector<8x128xi32>
    %119 = arith.maxsi %118, %44 : vector<8x128xi32>
    %120 = vector.broadcast %c7_i32_35 : i32 to vector<8x128xi32>
    %121 = arith.minsi %120, %119 : vector<8x128xi32>
    %122 = arith.addi %117, %121 : vector<8x128xi32>
    %c0_36 = arith.constant 0 : index
    %c0_37 = arith.constant 0 : index
    %c0_38 = arith.constant 0 : index
    %123 = vector.load %arg4[%c0_36, %c0_37, %c0_38] : memref<1x8x128xi32, #tpu.memory_space<vmem>>, vector<1x8x128xi32>
    %124 = vector.shape_cast %123 : vector<1x8x128xi32> to vector<8x128xi32>
    %125 = vector.shape_cast %122 : vector<8x128xi32> to vector<1x8x128xi32>
    tpu.vector_store %arg4[%c0_36, %c0_37, %c0_38], %125 {strides = array<i32>} : memref<1x8x128xi32, #tpu.memory_space<vmem>>, vector<1x8x128xi32>,
    %126 = arith.mulf %53, %21 : vector<8x128xf32>
    %c0_39 = arith.constant 0 : index
    %c0_40 = arith.constant 0 : index
    %c0_41 = arith.constant 0 : index
    %c0_42 = arith.constant 0 : index
    %127 = vector.load %arg5[%c0_39, %c0_40, %c0_41, %c0_42] : memref<1x6x8x128xf32, #tpu.memory_space<vmem>>, vector<1x1x8x128xf32>
    %128 = vector.shape_cast %127 : vector<1x1x8x128xf32> to vector<8x128xf32>
    %129 = vector.shape_cast %126 : vector<8x128xf32> to vector<1x1x8x128xf32>
    tpu.vector_store %arg5[%c0_39, %c0_40, %c0_41, %c0_42], %129 {strides = array<i32>} : memref<1x6x8x128xf32, #tpu.memory_space<vmem>>, vector<1x1x8x128xf32>,
    %130 = arith.mulf %64, %21 : vector<8x128xf32>
    %c0_43 = arith.constant 0 : index
    %c1 = arith.constant 1 : index
    %c0_44 = arith.constant 0 : index
    %c0_45 = arith.constant 0 : index
    %131 = vector.load %arg5[%c0_43, %c1, %c0_44, %c0_45] : memref<1x6x8x128xf32, #tpu.memory_space<vmem>>, vector<1x1x8x128xf32>
    %132 = vector.shape_cast %131 : vector<1x1x8x128xf32> to vector<8x128xf32>
    %133 = vector.shape_cast %130 : vector<8x128xf32> to vector<1x1x8x128xf32>
    tpu.vector_store %arg5[%c0_43, %c1, %c0_44, %c0_45], %133 {strides = array<i32>} : memref<1x6x8x128xf32, #tpu.memory_space<vmem>>, vector<1x1x8x128xf32>,
    %c0_46 = arith.constant 0 : index
    %c2 = arith.constant 2 : index
    %c0_47 = arith.constant 0 : index
    %c0_48 = arith.constant 0 : index
    %134 = vector.load %arg5[%c0_46, %c2, %c0_47, %c0_48] : memref<1x6x8x128xf32, #tpu.memory_space<vmem>>, vector<1x1x8x128xf32>
    %135 = vector.shape_cast %134 : vector<1x1x8x128xf32> to vector<8x128xf32>
    %136 = vector.shape_cast %73 : vector<8x128xf32> to vector<1x1x8x128xf32>
    tpu.vector_store %arg5[%c0_46, %c2, %c0_47, %c0_48], %136 {strides = array<i32>} : memref<1x6x8x128xf32, #tpu.memory_space<vmem>>, vector<1x1x8x128xf32>,
    %c0_49 = arith.constant 0 : index
    %c3 = arith.constant 3 : index
    %c0_50 = arith.constant 0 : index
    %c0_51 = arith.constant 0 : index
    %137 = vector.load %arg5[%c0_49, %c3, %c0_50, %c0_51] : memref<1x6x8x128xf32, #tpu.memory_space<vmem>>, vector<1x1x8x128xf32>
    %138 = vector.shape_cast %137 : vector<1x1x8x128xf32> to vector<8x128xf32>
    %139 = vector.shape_cast %84 : vector<8x128xf32> to vector<1x1x8x128xf32>
    tpu.vector_store %arg5[%c0_49, %c3, %c0_50, %c0_51], %139 {strides = array<i32>} : memref<1x6x8x128xf32, #tpu.memory_space<vmem>>, vector<1x1x8x128xf32>,
    %c0_52 = arith.constant 0 : index
    %c4 = arith.constant 4 : index
    %c0_53 = arith.constant 0 : index
    %c0_54 = arith.constant 0 : index
    %140 = vector.load %arg5[%c0_52, %c4, %c0_53, %c0_54] : memref<1x6x8x128xf32, #tpu.memory_space<vmem>>, vector<1x1x8x128xf32>
    %141 = vector.shape_cast %140 : vector<1x1x8x128xf32> to vector<8x128xf32>
    %142 = vector.shape_cast %93 : vector<8x128xf32> to vector<1x1x8x128xf32>
    tpu.vector_store %arg5[%c0_52, %c4, %c0_53, %c0_54], %142 {strides = array<i32>} : memref<1x6x8x128xf32, #tpu.memory_space<vmem>>, vector<1x1x8x128xf32>,
    %c0_55 = arith.constant 0 : index
    %c5 = arith.constant 5 : index
    %c0_56 = arith.constant 0 : index
    %c0_57 = arith.constant 0 : index
    %143 = vector.load %arg5[%c0_55, %c5, %c0_56, %c0_57] : memref<1x6x8x128xf32, #tpu.memory_space<vmem>>, vector<1x1x8x128xf32>
    %144 = vector.shape_cast %143 : vector<1x1x8x128xf32> to vector<8x128xf32>
    %145 = vector.shape_cast %104 : vector<8x128xf32> to vector<1x1x8x128xf32>
    tpu.vector_store %arg5[%c0_55, %c5, %c0_56, %c0_57], %145 {strides = array<i32>} : memref<1x6x8x128xf32, #tpu.memory_space<vmem>>, vector<1x1x8x128xf32>,
    return
  }
  func.func @transform_0(%arg0: i32, %arg1: i32, %arg2: i32) -> (i32, i32, i32, i32) {
    %c0_i32 = arith.constant 0 : i32
    %c0_i32_0 = arith.constant 0 : i32
    return %arg0, %c0_i32, %arg1, %arg2 : i32, i32, i32, i32
  }
  func.func @transform_1(%arg0: i32, %arg1: i32, %arg2: i32) -> (i32, i32, i32) {
    %c0_i32 = arith.constant 0 : i32
    return %arg0, %arg1, %arg2 : i32, i32, i32
  }
  func.func @transform_2(%arg0: i32, %arg1: i32, %arg2: i32) -> (i32, i32, i32, i32) {
    %c0_i32 = arith.constant 0 : i32
    %c0_i32_0 = arith.constant 0 : i32
    return %arg0, %c0_i32, %arg1, %arg2 : i32, i32, i32, i32
  }
}

module attributes {stable_mosaic.version = 11 : i64} {
  func.func @_blend_kernel(%arg0: i32, %arg1: i32, %arg2: i32, %arg3: memref<1x32x8x128xf32, #tpu.memory_space<vmem>>, %arg4: memref<1x6x8x128xf32, #tpu.memory_space<vmem>>, %arg5: memref<1x4x8x128xf32, #tpu.memory_space<vmem>>) attributes {dimension_semantics = [#tpu.dimension_semantics<parallel>, #tpu.dimension_semantics<parallel>, #tpu.dimension_semantics<parallel>], iteration_bounds = array<i64: 2, 1, 1>, scalar_prefetch = 0 : i64, scratch_operands = 0 : i64, tpu.core_type = #tpu.core_type<tc>, window_params = [{transform_indices = @transform_0, window_bounds = array<i64: 1, 32, 8, 128>}, {transform_indices = @transform_1, window_bounds = array<i64: 1, 6, 8, 128>}, {transform_indices = @transform_2, window_bounds = array<i64: 1, 4, 8, 128>}]} {
    %c0 = arith.constant 0 : index
    %c0_0 = arith.constant 0 : index
    %c0_1 = arith.constant 0 : index
    %c0_2 = arith.constant 0 : index
    %0 = vector.load %arg4[%c0, %c0_0, %c0_1, %c0_2] : memref<1x6x8x128xf32, #tpu.memory_space<vmem>>, vector<1x6x8x128xf32>
    %1 = vector.shape_cast %0 : vector<1x6x8x128xf32> to vector<6x8x128xf32>
    %2 = vector.extract_strided_slice %1 {offsets = [0, 0, 0], sizes = [1, 8, 128], strides = [1, 1, 1]} : vector<6x8x128xf32> to vector<1x8x128xf32>
    %3 = vector.shape_cast %2 : vector<1x8x128xf32> to vector<8x128xf32>
    %4 = vector.extract_strided_slice %1 {offsets = [2, 0, 0], sizes = [1, 8, 128], strides = [1, 1, 1]} : vector<6x8x128xf32> to vector<1x8x128xf32>
    %5 = vector.shape_cast %4 : vector<1x8x128xf32> to vector<8x128xf32>
    %6 = arith.mulf %3, %5 : vector<8x128xf32>
    %7 = vector.extract_strided_slice %1 {offsets = [4, 0, 0], sizes = [1, 8, 128], strides = [1, 1, 1]} : vector<6x8x128xf32> to vector<1x8x128xf32>
    %8 = vector.shape_cast %7 : vector<1x8x128xf32> to vector<8x128xf32>
    %9 = arith.mulf %6, %8 : vector<8x128xf32>
    %10 = vector.extract_strided_slice %1 {offsets = [0, 0, 0], sizes = [1, 8, 128], strides = [1, 1, 1]} : vector<6x8x128xf32> to vector<1x8x128xf32>
    %11 = vector.shape_cast %10 : vector<1x8x128xf32> to vector<8x128xf32>
    %12 = vector.extract_strided_slice %1 {offsets = [2, 0, 0], sizes = [1, 8, 128], strides = [1, 1, 1]} : vector<6x8x128xf32> to vector<1x8x128xf32>
    %13 = vector.shape_cast %12 : vector<1x8x128xf32> to vector<8x128xf32>
    %14 = arith.mulf %11, %13 : vector<8x128xf32>
    %15 = vector.extract_strided_slice %1 {offsets = [5, 0, 0], sizes = [1, 8, 128], strides = [1, 1, 1]} : vector<6x8x128xf32> to vector<1x8x128xf32>
    %16 = vector.shape_cast %15 : vector<1x8x128xf32> to vector<8x128xf32>
    %17 = arith.mulf %14, %16 : vector<8x128xf32>
    %18 = vector.extract_strided_slice %1 {offsets = [0, 0, 0], sizes = [1, 8, 128], strides = [1, 1, 1]} : vector<6x8x128xf32> to vector<1x8x128xf32>
    %19 = vector.shape_cast %18 : vector<1x8x128xf32> to vector<8x128xf32>
    %20 = vector.extract_strided_slice %1 {offsets = [3, 0, 0], sizes = [1, 8, 128], strides = [1, 1, 1]} : vector<6x8x128xf32> to vector<1x8x128xf32>
    %21 = vector.shape_cast %20 : vector<1x8x128xf32> to vector<8x128xf32>
    %22 = arith.mulf %19, %21 : vector<8x128xf32>
    %23 = vector.extract_strided_slice %1 {offsets = [4, 0, 0], sizes = [1, 8, 128], strides = [1, 1, 1]} : vector<6x8x128xf32> to vector<1x8x128xf32>
    %24 = vector.shape_cast %23 : vector<1x8x128xf32> to vector<8x128xf32>
    %25 = arith.mulf %22, %24 : vector<8x128xf32>
    %26 = vector.extract_strided_slice %1 {offsets = [0, 0, 0], sizes = [1, 8, 128], strides = [1, 1, 1]} : vector<6x8x128xf32> to vector<1x8x128xf32>
    %27 = vector.shape_cast %26 : vector<1x8x128xf32> to vector<8x128xf32>
    %28 = vector.extract_strided_slice %1 {offsets = [3, 0, 0], sizes = [1, 8, 128], strides = [1, 1, 1]} : vector<6x8x128xf32> to vector<1x8x128xf32>
    %29 = vector.shape_cast %28 : vector<1x8x128xf32> to vector<8x128xf32>
    %30 = arith.mulf %27, %29 : vector<8x128xf32>
    %31 = vector.extract_strided_slice %1 {offsets = [5, 0, 0], sizes = [1, 8, 128], strides = [1, 1, 1]} : vector<6x8x128xf32> to vector<1x8x128xf32>
    %32 = vector.shape_cast %31 : vector<1x8x128xf32> to vector<8x128xf32>
    %33 = arith.mulf %30, %32 : vector<8x128xf32>
    %34 = vector.extract_strided_slice %1 {offsets = [1, 0, 0], sizes = [1, 8, 128], strides = [1, 1, 1]} : vector<6x8x128xf32> to vector<1x8x128xf32>
    %35 = vector.shape_cast %34 : vector<1x8x128xf32> to vector<8x128xf32>
    %36 = vector.extract_strided_slice %1 {offsets = [2, 0, 0], sizes = [1, 8, 128], strides = [1, 1, 1]} : vector<6x8x128xf32> to vector<1x8x128xf32>
    %37 = vector.shape_cast %36 : vector<1x8x128xf32> to vector<8x128xf32>
    %38 = arith.mulf %35, %37 : vector<8x128xf32>
    %39 = vector.extract_strided_slice %1 {offsets = [4, 0, 0], sizes = [1, 8, 128], strides = [1, 1, 1]} : vector<6x8x128xf32> to vector<1x8x128xf32>
    %40 = vector.shape_cast %39 : vector<1x8x128xf32> to vector<8x128xf32>
    %41 = arith.mulf %38, %40 : vector<8x128xf32>
    %42 = vector.extract_strided_slice %1 {offsets = [1, 0, 0], sizes = [1, 8, 128], strides = [1, 1, 1]} : vector<6x8x128xf32> to vector<1x8x128xf32>
    %43 = vector.shape_cast %42 : vector<1x8x128xf32> to vector<8x128xf32>
    %44 = vector.extract_strided_slice %1 {offsets = [2, 0, 0], sizes = [1, 8, 128], strides = [1, 1, 1]} : vector<6x8x128xf32> to vector<1x8x128xf32>
    %45 = vector.shape_cast %44 : vector<1x8x128xf32> to vector<8x128xf32>
    %46 = arith.mulf %43, %45 : vector<8x128xf32>
    %47 = vector.extract_strided_slice %1 {offsets = [5, 0, 0], sizes = [1, 8, 128], strides = [1, 1, 1]} : vector<6x8x128xf32> to vector<1x8x128xf32>
    %48 = vector.shape_cast %47 : vector<1x8x128xf32> to vector<8x128xf32>
    %49 = arith.mulf %46, %48 : vector<8x128xf32>
    %50 = vector.extract_strided_slice %1 {offsets = [1, 0, 0], sizes = [1, 8, 128], strides = [1, 1, 1]} : vector<6x8x128xf32> to vector<1x8x128xf32>
    %51 = vector.shape_cast %50 : vector<1x8x128xf32> to vector<8x128xf32>
    %52 = vector.extract_strided_slice %1 {offsets = [3, 0, 0], sizes = [1, 8, 128], strides = [1, 1, 1]} : vector<6x8x128xf32> to vector<1x8x128xf32>
    %53 = vector.shape_cast %52 : vector<1x8x128xf32> to vector<8x128xf32>
    %54 = arith.mulf %51, %53 : vector<8x128xf32>
    %55 = vector.extract_strided_slice %1 {offsets = [4, 0, 0], sizes = [1, 8, 128], strides = [1, 1, 1]} : vector<6x8x128xf32> to vector<1x8x128xf32>
    %56 = vector.shape_cast %55 : vector<1x8x128xf32> to vector<8x128xf32>
    %57 = arith.mulf %54, %56 : vector<8x128xf32>
    %58 = vector.extract_strided_slice %1 {offsets = [1, 0, 0], sizes = [1, 8, 128], strides = [1, 1, 1]} : vector<6x8x128xf32> to vector<1x8x128xf32>
    %59 = vector.shape_cast %58 : vector<1x8x128xf32> to vector<8x128xf32>
    %60 = vector.extract_strided_slice %1 {offsets = [3, 0, 0], sizes = [1, 8, 128], strides = [1, 1, 1]} : vector<6x8x128xf32> to vector<1x8x128xf32>
    %61 = vector.shape_cast %60 : vector<1x8x128xf32> to vector<8x128xf32>
    %62 = arith.mulf %59, %61 : vector<8x128xf32>
    %63 = vector.extract_strided_slice %1 {offsets = [5, 0, 0], sizes = [1, 8, 128], strides = [1, 1, 1]} : vector<6x8x128xf32> to vector<1x8x128xf32>
    %64 = vector.shape_cast %63 : vector<1x8x128xf32> to vector<8x128xf32>
    %65 = arith.mulf %62, %64 : vector<8x128xf32>
    %c0_3 = arith.constant 0 : index
    %c0_4 = arith.constant 0 : index
    %c0_5 = arith.constant 0 : index
    %c0_6 = arith.constant 0 : index
    %66 = vector.load %arg3[%c0_3, %c0_4, %c0_5, %c0_6] : memref<1x32x8x128xf32, #tpu.memory_space<vmem>>, vector<1x1x8x128xf32>
    %67 = vector.shape_cast %66 : vector<1x1x8x128xf32> to vector<8x128xf32>
    %68 = arith.mulf %67, %9 : vector<8x128xf32>
    %c0_7 = arith.constant 0 : index
    %c1 = arith.constant 1 : index
    %c0_8 = arith.constant 0 : index
    %c0_9 = arith.constant 0 : index
    %69 = vector.load %arg3[%c0_7, %c1, %c0_8, %c0_9] : memref<1x32x8x128xf32, #tpu.memory_space<vmem>>, vector<1x1x8x128xf32>
    %70 = vector.shape_cast %69 : vector<1x1x8x128xf32> to vector<8x128xf32>
    %71 = arith.mulf %70, %17 : vector<8x128xf32>
    %72 = arith.addf %68, %71 : vector<8x128xf32>
    %c0_10 = arith.constant 0 : index
    %c2 = arith.constant 2 : index
    %c0_11 = arith.constant 0 : index
    %c0_12 = arith.constant 0 : index
    %73 = vector.load %arg3[%c0_10, %c2, %c0_11, %c0_12] : memref<1x32x8x128xf32, #tpu.memory_space<vmem>>, vector<1x1x8x128xf32>
    %74 = vector.shape_cast %73 : vector<1x1x8x128xf32> to vector<8x128xf32>
    %75 = arith.mulf %74, %25 : vector<8x128xf32>
    %76 = arith.addf %72, %75 : vector<8x128xf32>
    %c0_13 = arith.constant 0 : index
    %c3 = arith.constant 3 : index
    %c0_14 = arith.constant 0 : index
    %c0_15 = arith.constant 0 : index
    %77 = vector.load %arg3[%c0_13, %c3, %c0_14, %c0_15] : memref<1x32x8x128xf32, #tpu.memory_space<vmem>>, vector<1x1x8x128xf32>
    %78 = vector.shape_cast %77 : vector<1x1x8x128xf32> to vector<8x128xf32>
    %79 = arith.mulf %78, %33 : vector<8x128xf32>
    %80 = arith.addf %76, %79 : vector<8x128xf32>
    %c0_16 = arith.constant 0 : index
    %c4 = arith.constant 4 : index
    %c0_17 = arith.constant 0 : index
    %c0_18 = arith.constant 0 : index
    %81 = vector.load %arg3[%c0_16, %c4, %c0_17, %c0_18] : memref<1x32x8x128xf32, #tpu.memory_space<vmem>>, vector<1x1x8x128xf32>
    %82 = vector.shape_cast %81 : vector<1x1x8x128xf32> to vector<8x128xf32>
    %83 = arith.mulf %82, %41 : vector<8x128xf32>
    %84 = arith.addf %80, %83 : vector<8x128xf32>
    %c0_19 = arith.constant 0 : index
    %c5 = arith.constant 5 : index
    %c0_20 = arith.constant 0 : index
    %c0_21 = arith.constant 0 : index
    %85 = vector.load %arg3[%c0_19, %c5, %c0_20, %c0_21] : memref<1x32x8x128xf32, #tpu.memory_space<vmem>>, vector<1x1x8x128xf32>
    %86 = vector.shape_cast %85 : vector<1x1x8x128xf32> to vector<8x128xf32>
    %87 = arith.mulf %86, %49 : vector<8x128xf32>
    %88 = arith.addf %84, %87 : vector<8x128xf32>
    %c0_22 = arith.constant 0 : index
    %c6 = arith.constant 6 : index
    %c0_23 = arith.constant 0 : index
    %c0_24 = arith.constant 0 : index
    %89 = vector.load %arg3[%c0_22, %c6, %c0_23, %c0_24] : memref<1x32x8x128xf32, #tpu.memory_space<vmem>>, vector<1x1x8x128xf32>
    %90 = vector.shape_cast %89 : vector<1x1x8x128xf32> to vector<8x128xf32>
    %91 = arith.mulf %90, %57 : vector<8x128xf32>
    %92 = arith.addf %88, %91 : vector<8x128xf32>
    %c0_25 = arith.constant 0 : index
    %c7 = arith.constant 7 : index
    %c0_26 = arith.constant 0 : index
    %c0_27 = arith.constant 0 : index
    %93 = vector.load %arg3[%c0_25, %c7, %c0_26, %c0_27] : memref<1x32x8x128xf32, #tpu.memory_space<vmem>>, vector<1x1x8x128xf32>
    %94 = vector.shape_cast %93 : vector<1x1x8x128xf32> to vector<8x128xf32>
    %95 = arith.mulf %94, %65 : vector<8x128xf32>
    %96 = arith.addf %92, %95 : vector<8x128xf32>
    %c0_28 = arith.constant 0 : index
    %c0_29 = arith.constant 0 : index
    %c0_30 = arith.constant 0 : index
    %c0_31 = arith.constant 0 : index
    %97 = vector.load %arg5[%c0_28, %c0_29, %c0_30, %c0_31] : memref<1x4x8x128xf32, #tpu.memory_space<vmem>>, vector<1x1x8x128xf32>
    %98 = vector.shape_cast %97 : vector<1x1x8x128xf32> to vector<8x128xf32>
    %99 = vector.shape_cast %96 : vector<8x128xf32> to vector<1x1x8x128xf32>
    tpu.vector_store %arg5[%c0_28, %c0_29, %c0_30, %c0_31], %99 {strides = array<i32>} : memref<1x4x8x128xf32, #tpu.memory_space<vmem>>, vector<1x1x8x128xf32>,
    %c0_32 = arith.constant 0 : index
    %c8 = arith.constant 8 : index
    %c0_33 = arith.constant 0 : index
    %c0_34 = arith.constant 0 : index
    %100 = vector.load %arg3[%c0_32, %c8, %c0_33, %c0_34] : memref<1x32x8x128xf32, #tpu.memory_space<vmem>>, vector<1x1x8x128xf32>
    %101 = vector.shape_cast %100 : vector<1x1x8x128xf32> to vector<8x128xf32>
    %102 = arith.mulf %101, %9 : vector<8x128xf32>
    %c0_35 = arith.constant 0 : index
    %c9 = arith.constant 9 : index
    %c0_36 = arith.constant 0 : index
    %c0_37 = arith.constant 0 : index
    %103 = vector.load %arg3[%c0_35, %c9, %c0_36, %c0_37] : memref<1x32x8x128xf32, #tpu.memory_space<vmem>>, vector<1x1x8x128xf32>
    %104 = vector.shape_cast %103 : vector<1x1x8x128xf32> to vector<8x128xf32>
    %105 = arith.mulf %104, %17 : vector<8x128xf32>
    %106 = arith.addf %102, %105 : vector<8x128xf32>
    %c0_38 = arith.constant 0 : index
    %c10 = arith.constant 10 : index
    %c0_39 = arith.constant 0 : index
    %c0_40 = arith.constant 0 : index
    %107 = vector.load %arg3[%c0_38, %c10, %c0_39, %c0_40] : memref<1x32x8x128xf32, #tpu.memory_space<vmem>>, vector<1x1x8x128xf32>
    %108 = vector.shape_cast %107 : vector<1x1x8x128xf32> to vector<8x128xf32>
    %109 = arith.mulf %108, %25 : vector<8x128xf32>
    %110 = arith.addf %106, %109 : vector<8x128xf32>
    %c0_41 = arith.constant 0 : index
    %c11 = arith.constant 11 : index
    %c0_42 = arith.constant 0 : index
    %c0_43 = arith.constant 0 : index
    %111 = vector.load %arg3[%c0_41, %c11, %c0_42, %c0_43] : memref<1x32x8x128xf32, #tpu.memory_space<vmem>>, vector<1x1x8x128xf32>
    %112 = vector.shape_cast %111 : vector<1x1x8x128xf32> to vector<8x128xf32>
    %113 = arith.mulf %112, %33 : vector<8x128xf32>
    %114 = arith.addf %110, %113 : vector<8x128xf32>
    %c0_44 = arith.constant 0 : index
    %c12 = arith.constant 12 : index
    %c0_45 = arith.constant 0 : index
    %c0_46 = arith.constant 0 : index
    %115 = vector.load %arg3[%c0_44, %c12, %c0_45, %c0_46] : memref<1x32x8x128xf32, #tpu.memory_space<vmem>>, vector<1x1x8x128xf32>
    %116 = vector.shape_cast %115 : vector<1x1x8x128xf32> to vector<8x128xf32>
    %117 = arith.mulf %116, %41 : vector<8x128xf32>
    %118 = arith.addf %114, %117 : vector<8x128xf32>
    %c0_47 = arith.constant 0 : index
    %c13 = arith.constant 13 : index
    %c0_48 = arith.constant 0 : index
    %c0_49 = arith.constant 0 : index
    %119 = vector.load %arg3[%c0_47, %c13, %c0_48, %c0_49] : memref<1x32x8x128xf32, #tpu.memory_space<vmem>>, vector<1x1x8x128xf32>
    %120 = vector.shape_cast %119 : vector<1x1x8x128xf32> to vector<8x128xf32>
    %121 = arith.mulf %120, %49 : vector<8x128xf32>
    %122 = arith.addf %118, %121 : vector<8x128xf32>
    %c0_50 = arith.constant 0 : index
    %c14 = arith.constant 14 : index
    %c0_51 = arith.constant 0 : index
    %c0_52 = arith.constant 0 : index
    %123 = vector.load %arg3[%c0_50, %c14, %c0_51, %c0_52] : memref<1x32x8x128xf32, #tpu.memory_space<vmem>>, vector<1x1x8x128xf32>
    %124 = vector.shape_cast %123 : vector<1x1x8x128xf32> to vector<8x128xf32>
    %125 = arith.mulf %124, %57 : vector<8x128xf32>
    %126 = arith.addf %122, %125 : vector<8x128xf32>
    %c0_53 = arith.constant 0 : index
    %c15 = arith.constant 15 : index
    %c0_54 = arith.constant 0 : index
    %c0_55 = arith.constant 0 : index
    %127 = vector.load %arg3[%c0_53, %c15, %c0_54, %c0_55] : memref<1x32x8x128xf32, #tpu.memory_space<vmem>>, vector<1x1x8x128xf32>
    %128 = vector.shape_cast %127 : vector<1x1x8x128xf32> to vector<8x128xf32>
    %129 = arith.mulf %128, %65 : vector<8x128xf32>
    %130 = arith.addf %126, %129 : vector<8x128xf32>
    %c0_56 = arith.constant 0 : index
    %c1_57 = arith.constant 1 : index
    %c0_58 = arith.constant 0 : index
    %c0_59 = arith.constant 0 : index
    %131 = vector.load %arg5[%c0_56, %c1_57, %c0_58, %c0_59] : memref<1x4x8x128xf32, #tpu.memory_space<vmem>>, vector<1x1x8x128xf32>
    %132 = vector.shape_cast %131 : vector<1x1x8x128xf32> to vector<8x128xf32>
    %133 = vector.shape_cast %130 : vector<8x128xf32> to vector<1x1x8x128xf32>
    tpu.vector_store %arg5[%c0_56, %c1_57, %c0_58, %c0_59], %133 {strides = array<i32>} : memref<1x4x8x128xf32, #tpu.memory_space<vmem>>, vector<1x1x8x128xf32>,
    %c0_60 = arith.constant 0 : index
    %c16 = arith.constant 16 : index
    %c0_61 = arith.constant 0 : index
    %c0_62 = arith.constant 0 : index
    %134 = vector.load %arg3[%c0_60, %c16, %c0_61, %c0_62] : memref<1x32x8x128xf32, #tpu.memory_space<vmem>>, vector<1x1x8x128xf32>
    %135 = vector.shape_cast %134 : vector<1x1x8x128xf32> to vector<8x128xf32>
    %136 = arith.mulf %135, %9 : vector<8x128xf32>
    %c0_63 = arith.constant 0 : index
    %c17 = arith.constant 17 : index
    %c0_64 = arith.constant 0 : index
    %c0_65 = arith.constant 0 : index
    %137 = vector.load %arg3[%c0_63, %c17, %c0_64, %c0_65] : memref<1x32x8x128xf32, #tpu.memory_space<vmem>>, vector<1x1x8x128xf32>
    %138 = vector.shape_cast %137 : vector<1x1x8x128xf32> to vector<8x128xf32>
    %139 = arith.mulf %138, %17 : vector<8x128xf32>
    %140 = arith.addf %136, %139 : vector<8x128xf32>
    %c0_66 = arith.constant 0 : index
    %c18 = arith.constant 18 : index
    %c0_67 = arith.constant 0 : index
    %c0_68 = arith.constant 0 : index
    %141 = vector.load %arg3[%c0_66, %c18, %c0_67, %c0_68] : memref<1x32x8x128xf32, #tpu.memory_space<vmem>>, vector<1x1x8x128xf32>
    %142 = vector.shape_cast %141 : vector<1x1x8x128xf32> to vector<8x128xf32>
    %143 = arith.mulf %142, %25 : vector<8x128xf32>
    %144 = arith.addf %140, %143 : vector<8x128xf32>
    %c0_69 = arith.constant 0 : index
    %c19 = arith.constant 19 : index
    %c0_70 = arith.constant 0 : index
    %c0_71 = arith.constant 0 : index
    %145 = vector.load %arg3[%c0_69, %c19, %c0_70, %c0_71] : memref<1x32x8x128xf32, #tpu.memory_space<vmem>>, vector<1x1x8x128xf32>
    %146 = vector.shape_cast %145 : vector<1x1x8x128xf32> to vector<8x128xf32>
    %147 = arith.mulf %146, %33 : vector<8x128xf32>
    %148 = arith.addf %144, %147 : vector<8x128xf32>
    %c0_72 = arith.constant 0 : index
    %c20 = arith.constant 20 : index
    %c0_73 = arith.constant 0 : index
    %c0_74 = arith.constant 0 : index
    %149 = vector.load %arg3[%c0_72, %c20, %c0_73, %c0_74] : memref<1x32x8x128xf32, #tpu.memory_space<vmem>>, vector<1x1x8x128xf32>
    %150 = vector.shape_cast %149 : vector<1x1x8x128xf32> to vector<8x128xf32>
    %151 = arith.mulf %150, %41 : vector<8x128xf32>
    %152 = arith.addf %148, %151 : vector<8x128xf32>
    %c0_75 = arith.constant 0 : index
    %c21 = arith.constant 21 : index
    %c0_76 = arith.constant 0 : index
    %c0_77 = arith.constant 0 : index
    %153 = vector.load %arg3[%c0_75, %c21, %c0_76, %c0_77] : memref<1x32x8x128xf32, #tpu.memory_space<vmem>>, vector<1x1x8x128xf32>
    %154 = vector.shape_cast %153 : vector<1x1x8x128xf32> to vector<8x128xf32>
    %155 = arith.mulf %154, %49 : vector<8x128xf32>
    %156 = arith.addf %152, %155 : vector<8x128xf32>
    %c0_78 = arith.constant 0 : index
    %c22 = arith.constant 22 : index
    %c0_79 = arith.constant 0 : index
    %c0_80 = arith.constant 0 : index
    %157 = vector.load %arg3[%c0_78, %c22, %c0_79, %c0_80] : memref<1x32x8x128xf32, #tpu.memory_space<vmem>>, vector<1x1x8x128xf32>
    %158 = vector.shape_cast %157 : vector<1x1x8x128xf32> to vector<8x128xf32>
    %159 = arith.mulf %158, %57 : vector<8x128xf32>
    %160 = arith.addf %156, %159 : vector<8x128xf32>
    %c0_81 = arith.constant 0 : index
    %c23 = arith.constant 23 : index
    %c0_82 = arith.constant 0 : index
    %c0_83 = arith.constant 0 : index
    %161 = vector.load %arg3[%c0_81, %c23, %c0_82, %c0_83] : memref<1x32x8x128xf32, #tpu.memory_space<vmem>>, vector<1x1x8x128xf32>
    %162 = vector.shape_cast %161 : vector<1x1x8x128xf32> to vector<8x128xf32>
    %163 = arith.mulf %162, %65 : vector<8x128xf32>
    %164 = arith.addf %160, %163 : vector<8x128xf32>
    %c0_84 = arith.constant 0 : index
    %c2_85 = arith.constant 2 : index
    %c0_86 = arith.constant 0 : index
    %c0_87 = arith.constant 0 : index
    %165 = vector.load %arg5[%c0_84, %c2_85, %c0_86, %c0_87] : memref<1x4x8x128xf32, #tpu.memory_space<vmem>>, vector<1x1x8x128xf32>
    %166 = vector.shape_cast %165 : vector<1x1x8x128xf32> to vector<8x128xf32>
    %167 = vector.shape_cast %164 : vector<8x128xf32> to vector<1x1x8x128xf32>
    tpu.vector_store %arg5[%c0_84, %c2_85, %c0_86, %c0_87], %167 {strides = array<i32>} : memref<1x4x8x128xf32, #tpu.memory_space<vmem>>, vector<1x1x8x128xf32>,
    %c0_88 = arith.constant 0 : index
    %c24 = arith.constant 24 : index
    %c0_89 = arith.constant 0 : index
    %c0_90 = arith.constant 0 : index
    %168 = vector.load %arg3[%c0_88, %c24, %c0_89, %c0_90] : memref<1x32x8x128xf32, #tpu.memory_space<vmem>>, vector<1x1x8x128xf32>
    %169 = vector.shape_cast %168 : vector<1x1x8x128xf32> to vector<8x128xf32>
    %170 = arith.mulf %169, %9 : vector<8x128xf32>
    %c0_91 = arith.constant 0 : index
    %c25 = arith.constant 25 : index
    %c0_92 = arith.constant 0 : index
    %c0_93 = arith.constant 0 : index
    %171 = vector.load %arg3[%c0_91, %c25, %c0_92, %c0_93] : memref<1x32x8x128xf32, #tpu.memory_space<vmem>>, vector<1x1x8x128xf32>
    %172 = vector.shape_cast %171 : vector<1x1x8x128xf32> to vector<8x128xf32>
    %173 = arith.mulf %172, %17 : vector<8x128xf32>
    %174 = arith.addf %170, %173 : vector<8x128xf32>
    %c0_94 = arith.constant 0 : index
    %c26 = arith.constant 26 : index
    %c0_95 = arith.constant 0 : index
    %c0_96 = arith.constant 0 : index
    %175 = vector.load %arg3[%c0_94, %c26, %c0_95, %c0_96] : memref<1x32x8x128xf32, #tpu.memory_space<vmem>>, vector<1x1x8x128xf32>
    %176 = vector.shape_cast %175 : vector<1x1x8x128xf32> to vector<8x128xf32>
    %177 = arith.mulf %176, %25 : vector<8x128xf32>
    %178 = arith.addf %174, %177 : vector<8x128xf32>
    %c0_97 = arith.constant 0 : index
    %c27 = arith.constant 27 : index
    %c0_98 = arith.constant 0 : index
    %c0_99 = arith.constant 0 : index
    %179 = vector.load %arg3[%c0_97, %c27, %c0_98, %c0_99] : memref<1x32x8x128xf32, #tpu.memory_space<vmem>>, vector<1x1x8x128xf32>
    %180 = vector.shape_cast %179 : vector<1x1x8x128xf32> to vector<8x128xf32>
    %181 = arith.mulf %180, %33 : vector<8x128xf32>
    %182 = arith.addf %178, %181 : vector<8x128xf32>
    %c0_100 = arith.constant 0 : index
    %c28 = arith.constant 28 : index
    %c0_101 = arith.constant 0 : index
    %c0_102 = arith.constant 0 : index
    %183 = vector.load %arg3[%c0_100, %c28, %c0_101, %c0_102] : memref<1x32x8x128xf32, #tpu.memory_space<vmem>>, vector<1x1x8x128xf32>
    %184 = vector.shape_cast %183 : vector<1x1x8x128xf32> to vector<8x128xf32>
    %185 = arith.mulf %184, %41 : vector<8x128xf32>
    %186 = arith.addf %182, %185 : vector<8x128xf32>
    %c0_103 = arith.constant 0 : index
    %c29 = arith.constant 29 : index
    %c0_104 = arith.constant 0 : index
    %c0_105 = arith.constant 0 : index
    %187 = vector.load %arg3[%c0_103, %c29, %c0_104, %c0_105] : memref<1x32x8x128xf32, #tpu.memory_space<vmem>>, vector<1x1x8x128xf32>
    %188 = vector.shape_cast %187 : vector<1x1x8x128xf32> to vector<8x128xf32>
    %189 = arith.mulf %188, %49 : vector<8x128xf32>
    %190 = arith.addf %186, %189 : vector<8x128xf32>
    %c0_106 = arith.constant 0 : index
    %c30 = arith.constant 30 : index
    %c0_107 = arith.constant 0 : index
    %c0_108 = arith.constant 0 : index
    %191 = vector.load %arg3[%c0_106, %c30, %c0_107, %c0_108] : memref<1x32x8x128xf32, #tpu.memory_space<vmem>>, vector<1x1x8x128xf32>
    %192 = vector.shape_cast %191 : vector<1x1x8x128xf32> to vector<8x128xf32>
    %193 = arith.mulf %192, %57 : vector<8x128xf32>
    %194 = arith.addf %190, %193 : vector<8x128xf32>
    %c0_109 = arith.constant 0 : index
    %c31 = arith.constant 31 : index
    %c0_110 = arith.constant 0 : index
    %c0_111 = arith.constant 0 : index
    %195 = vector.load %arg3[%c0_109, %c31, %c0_110, %c0_111] : memref<1x32x8x128xf32, #tpu.memory_space<vmem>>, vector<1x1x8x128xf32>
    %196 = vector.shape_cast %195 : vector<1x1x8x128xf32> to vector<8x128xf32>
    %197 = arith.mulf %196, %65 : vector<8x128xf32>
    %198 = arith.addf %194, %197 : vector<8x128xf32>
    %c0_112 = arith.constant 0 : index
    %c3_113 = arith.constant 3 : index
    %c0_114 = arith.constant 0 : index
    %c0_115 = arith.constant 0 : index
    %199 = vector.load %arg5[%c0_112, %c3_113, %c0_114, %c0_115] : memref<1x4x8x128xf32, #tpu.memory_space<vmem>>, vector<1x1x8x128xf32>
    %200 = vector.shape_cast %199 : vector<1x1x8x128xf32> to vector<8x128xf32>
    %201 = vector.shape_cast %198 : vector<8x128xf32> to vector<1x1x8x128xf32>
    tpu.vector_store %arg5[%c0_112, %c3_113, %c0_114, %c0_115], %201 {strides = array<i32>} : memref<1x4x8x128xf32, #tpu.memory_space<vmem>>, vector<1x1x8x128xf32>,
    return
  }
  func.func @transform_0(%arg0: i32, %arg1: i32, %arg2: i32) -> (i32, i32, i32, i32) {
    %c0_i32 = arith.constant 0 : i32
    %c0_i32_0 = arith.constant 0 : i32
    return %arg0, %c0_i32, %arg1, %arg2 : i32, i32, i32, i32
  }
  func.func @transform_1(%arg0: i32, %arg1: i32, %arg2: i32) -> (i32, i32, i32, i32) {
    %c0_i32 = arith.constant 0 : i32
    %c0_i32_0 = arith.constant 0 : i32
    return %arg0, %c0_i32, %arg1, %arg2 : i32, i32, i32, i32
  }
  func.func @transform_2(%arg0: i32, %arg1: i32, %arg2: i32) -> (i32, i32, i32, i32) {
    %c0_i32 = arith.constant 0 : i32
    %c0_i32_0 = arith.constant 0 : i32
    return %arg0, %c0_i32, %arg1, %arg2 : i32, i32, i32, i32
  }
}

</mosaic_0001>

<bundles_post_ra>
// kernel: spatial_transformer_3d.2
= control target key start
LH: loop header
LB: loop body
LE: loop exit
PB: predicated region body
PF: predicated region fallthrough
CT: control target
= control target key end

     0   :  { %s567_s9 = smov 0   ;;  %s569_s10 = smov 0   ;;  %s616_s0 = inlined_call_operand.vmem [shape: f32[2,3,8,128], index: 0, kind: input, shape index: {}]   ;;  %s617_s1 = inlined_call_operand.vmem [shape: s32[2,8,128], index: 1, kind: output, shape index: {0}]   ;;  %s618_s2 = inlined_call_operand.vmem [shape: f32[2,6,8,128], index: 2, kind: output, shape index: {1}]  }
   0x1   :  { %s571_s11 = smov 0  }
   0x2 LB: > { %s32_s12 = sadd.s32 1, %s545_s10  ;;  %p480_p0 = scmp.ge.s32.totalorder %s549_s11, 1  ;;  %s549_s11 = sphi %s571_s11, %s13_s11   ;;  %s545_s10 = sphi %s569_s10, %s620_s10   ;;  %s541_s9 = sphi %s567_s9, %s619_s9  }
   0x3   : > { %p34_p1 = scmp.ge.s32.totalorder %s32_s12, 2  ;;  %p152_p2 = scmp.lt.s32.totalorder %s549_s11, 3 }
   0x5   : > { %s622_s12 = smov (%p34_p1, %s32_s12), 0  ;;  %p153_p3 = pnand %p480_p0, %p152_p2 }
   0x6   : > { %p196_p4 = scmp.lt.s32.totalorder (!%p153_p3), %s541_s9, 1 }
   0x7   : > { %156 = sbr.rel (%p153_p3) target bundleno = 49 (0x31), region = 24 }
   0xc   : > { %v228_v0 = vlaneseq  ;;  %s624_s9 = smov (!%p196_p4, %s541_s9), 1  ;;  %v551_v20 = vmov 0.0  }
   0xd   : > { %s492_s13 = smul.u32 24, %s624_s9  ;;  %s482_s21 = sshll.u32 %s624_s9, 3 }
   0xe   : > { %v229_v1 = vshrl.u32 %v228_v0, 7  ;;  %v234_v2 = vand.u32 127, %v228_v0  ;;  %s493_s17 = smul.u32 48, %s624_s9  ;;  %s216_s24 = scalar_lea.vmem %s617_s1, %s482_s21 }
   0xf   : > { %s206_s16 = scalar_lea.vmem %s616_s0, %s492_s13 }
  0x10   : > { %v238_v3 = vcvt.s32.f32 %v234_v2  ;;  %v251_v4 = vcvt.s32.f32 %v229_v1  ;;  %v248_v6 = vld [vmem:[%s206_s16] sm:$0xff]  ;;  %vm245_vm0 = vcmp.lt.s32.totalorder %v234_v2, 64  ;;  %v249_v16 = vld [vmem:[%s206_s16 + $0x8] sm:$0xff]  ;;  %v250_v26 = vld [vmem:[%s206_s16 + $0x10] sm:$0xff]  ;;  %s595_s20 = scalar_lea.vmem %s618_s2, %s493_s17 }
  0x11   : > { %v484_v21 = vsel %vm245_vm0, 1.0, %v551_v20 }
  0x12   : > { %v239_v5 = vadd.f32 0.5, %v238_v3  ;;  %v252_v8 = vadd.f32 %v251_v4, %v248_v6 }
  0x14   : > { %v240_v7 = vmul.f32 0.125, %v239_v5  ;;  %v257_v10 = vfloor.f32 %v252_v8 }
  0x16   : > { %v241_v9 = vfloor.f32 %v240_v7  ;;  %v496_v12 = vtrunc.f32 %v257_v10  ;;  %v260_v13 = vsub.f32 %v252_v8, %v257_v10 }
  0x18   : > { %v494_v11 = vtrunc.f32 %v241_v9  ;;  %v497_v15 = vcvt.f32.s32 %v496_v12  ;;  %v269_v17 = vsub.f32 1.0, %v260_v13 }
  0x1a   : > { %v495_v14 = vcvt.f32.s32 %v494_v11  ;;  %vm296_vm1 = vcmp.gt.s32.totalorder %v497_v15, 4294967295  ;;  %vm266_vm2 = vcmp.ge.s32.totalorder %v497_v15, 0  ;;  %vm267_vm3 = vcmp.le.s32.totalorder %v497_v15, 7 }
  0x1b   : > { %v271_v22 = vadd.s32 1, %v497_v15  ;;  %v297_v25 = vsel %vm296_vm1, %v497_v15, 4294967295  ;;  %vm268_vm4 = vmand %vm266_vm2, %vm267_vm3 }
  0x1c   : > { %v243_v18 = vmul.u32 8, %v495_v14  ;;  %v253_v19 = vcvt.s32.f32 %v495_v14  ;;  %v270_v27 = vsel %vm268_vm4, %v269_v17, 0.0  ;;  %vm298_vm8 = vcmp.lt.s32.totalorder %v297_v25, 7 }
  0x1d   : > { %vm272_vm5 = vcmp.ge.s32.totalorder %v271_v22, 0  ;;  %vm273_vm6 = vcmp.le.s32.totalorder %v271_v22, 7  ;;  %v313_v30 = vmul.f32 %v484_v21, %v270_v27  ;;  %v299_v39 = vsel %vm298_vm8, %v297_v25, 7 }
  0x1e   : > { %v244_v23 = vsub.s32 %v234_v2, %v243_v18  ;;  %v254_v24 = vadd.f32 %v253_v19, %v249_v16  ;;  %vm274_vm7 = vmand %vm272_vm5, %vm273_vm6  ;;  %v300_v45 = vmul.u32 64, %v299_v39 }
  0x1f   : > { %v275_v31 = vsel %vm274_vm7, %v260_v13, 0.0  ;;  %314 = vst [vmem:[%s595_s20] sm:$0xff] %v313_v30 }
  0x20   : > { %v255_v28 = vcvt.s32.f32 %v244_v23  ;;  %v258_v29 = vfloor.f32 %v254_v24  ;;  %v315_v34 = vmul.f32 %v484_v21, %v275_v31 }
  0x22   : > { %v256_v32 = vadd.f32 %v255_v28, %v250_v26  ;;  %v498_v33 = vtrunc.f32 %v258_v29  ;;  %v261_v35 = vsub.f32 %v254_v24, %v258_v29  ;;  %485 = vst [vmem:[%s595_s20 + $0x8] sm:$0xff] %v315_v34 }
  0x24   : > { %v259_v36 = vfloor.f32 %v256_v32  ;;  %v499_v37 = vcvt.f32.s32 %v498_v33  ;;  %v279_v38 = vsub.f32 1.0, %v261_v35 }
  0x26   : > { %v500_v40 = vtrunc.f32 %v259_v36  ;;  %vm301_vm9 = vcmp.gt.s32.totalorder %v499_v37, 4294967295  ;;  %vm276_vm10 = vcmp.ge.s32.totalorder %v499_v37, 0  ;;  %vm277_vm11 = vcmp.le.s32.totalorder %v499_v37, 7 }
  0x27   : > { %v302_v41 = vsel %vm301_vm9, %v499_v37, 4294967295  ;;  %vm278_vm12 = vmand %vm276_vm10, %vm277_vm11  ;;  %v281_v42 = vadd.s32 1, %v499_v37  ;;  %v262_v43 = vsub.f32 %v256_v32, %v259_v36 }
  0x28   : > { %v501_v44 = vcvt.f32.s32 %v500_v40  ;;  %vm303_vm13 = vcmp.lt.s32.totalorder %v302_v41, 7  ;;  %v280_v46 = vsel %vm278_vm12, %v279_v38, 0.0 }
  0x29   : > { %v304_v47 = vsel %vm303_vm13, %v302_v41, 7  ;;  %486 = vst [vmem:[%s595_s20 + $0x10] sm:$0xff] %v280_v46  ;;  %vm282_vm14 = vcmp.ge.s32.totalorder %v281_v42, 0  ;;  %vm283_vm15 = vcmp.le.s32.totalorder %v281_v42, 7  ;;  %v289_v48 = vsub.f32 1.0, %v262_v43 }
  0x2a   : > { %v305_v49 = vmul.u32 8, %v304_v47  ;;  %vm307_vm0 = vcmp.gt.s32.totalorder %v501_v44, 4294967295  ;;  %vm284_vm1 = vmand %vm282_vm14, %vm283_vm15  ;;  %vm286_vm2 = vcmp.ge.s32.totalorder %v501_v44, 0  ;;  %vm287_vm3 = vcmp.le.s32.totalorder %v501_v44, 7 }
  0x2b   : > { %v308_v50 = vsel %vm307_vm0, %v501_v44, 4294967295  ;;  %v285_v51 = vsel %vm284_vm1, %v261_v35, 0.0  ;;  %vm288_vm4 = vmand %vm286_vm2, %vm287_vm3  ;;  %v291_v52 = vadd.s32 1, %v501_v44 }
  0x2c   : > { %v306_v53 = vadd.s32 %v305_v49, %v300_v45  ;;  %vm309_vm5 = vcmp.lt.s32.totalorder %v308_v50, 7  ;;  %487 = vst [vmem:[%s595_s20 + $0x18] sm:$0xff] %v285_v51  ;;  %v290_v54 = vsel %vm288_vm4, %v289_v48, 0.0 }
  0x2d   : > { %v310_v55 = vsel %vm309_vm5, %v308_v50, 7  ;;  %488 = vst [vmem:[%s595_s20 + $0x20] sm:$0xff] %v290_v54  ;;  %vm292_vm6 = vcmp.ge.s32.totalorder %v291_v52, 0  ;;  %vm293_vm7 = vcmp.le.s32.totalorder %v291_v52, 7 }
  0x2e   : > { %v311_v56 = vadd.s32 %v310_v55, %v306_v53  ;;  %vm294_vm8 = vmand %vm292_vm6, %vm293_vm7 }
  0x2f   : > { %v295_v57 = vsel %vm294_vm8, %v262_v43, 0.0 }
  0x30   : > { %312 = vst [vmem:[%s216_s24] sm:$0xff] %v311_v56  ;;  %489 = vst [vmem:[%s595_s20 + $0x28] sm:$0xff] %v295_v57 }
  0x31 PF: > { %s13_s11 = sadd.s32 1, %s549_s11   ;;  %s619_s9 = smov %s545_s10 }
  0x32   : > { %p10_p5 = scmp.ge.s32.totalorder %s13_s11, 4   ;;  %s620_s10 = smov %s622_s12 }
  0x34   :  { %12 = sbr.rel (!%p10_p5) target bundleno = 2 (0x2), region = 71 }

// kernel: spatial_transformer_3d.3
= control target key start
LH: loop header
LB: loop body
LE: loop exit
PB: predicated region body
PF: predicated region fallthrough
CT: control target
= control target key end

     0   :  { %s623_s9 = smov 0   ;;  %s625_s10 = smov 0   ;;  %s716_s0 = inlined_call_operand.vmem [shape: f32[2,32,8,128], index: 0, kind: input, shape index: {}]   ;;  %s717_s1 = inlined_call_operand.vmem [shape: f32[2,6,8,128], index: 1, kind: input, shape index: {}]   ;;  %s718_s2 = inlined_call_operand.vmem [shape: f32[2,4,8,128], index: 2, kind: output, shape index: {}]  }
   0x1   :  { %s627_s11 = smov 0  }
   0x2 LB: > { %s31_s12 = sadd.s32 1, %s602_s10  ;;  %p515_p0 = scmp.ge.s32.totalorder %s606_s11, 1  ;;  %s606_s11 = sphi %s627_s11, %s12_s11   ;;  %s602_s10 = sphi %s625_s10, %s720_s10   ;;  %s598_s9 = sphi %s623_s9, %s719_s9  }
   0x3   : > { %p33_p1 = scmp.ge.s32.totalorder %s31_s12, 2  ;;  %p165_p2 = scmp.lt.s32.totalorder %s606_s11, 3 }
   0x5   : > { %s722_s12 = smov (%p33_p1, %s31_s12), 0  ;;  %p166_p3 = pnand %p515_p0, %p165_p2 }
   0x6   : > { %p210_p4 = scmp.lt.s32.totalorder (!%p166_p3), %s598_s9, 1 }
   0x7   : > { %169 = sbr.rel (%p166_p3) target bundleno = 43 (0x2b), region = 28 }
   0xc   : > { %s724_s9 = smov (!%p210_p4, %s598_s9), 1 }
   0xd   : > { %s557_s13 = sshll.u32 %s724_s9, 8  ;;  %s559_s14 = smul.u32 48, %s724_s9 }
   0xe   : > { %s648_s17 = scalar_lea.vmem %s716_s0, %s557_s13  ;;  %s558_s21 = sshll.u32 %s724_s9, 5 }
   0xf   : > { %s231_s20 = scalar_lea.vmem %s717_s1, %s559_s14  ;;  %v261_v10 = vld [vmem:[%s648_s17] sm:$0xff]  ;;  %v521_v11 = vld [vmem:[%s648_s17 + $0x8] sm:$0xff]  ;;  %v522_v14 = vld [vmem:[%s648_s17 + $0x10] sm:$0xff]  ;;  %s242_s24 = scalar_lea.vmem %s718_s2, %s558_s21 }
  0x10   : > { %v243_v0 = vld [vmem:[%s231_s20] sm:$0xff]  ;;  %v244_v1 = vld [vmem:[%s231_s20 + $0x8] sm:$0xff]  ;;  %v245_v2 = vld [vmem:[%s231_s20 + $0x10] sm:$0xff] }
  0x11   : > { %v246_v3 = vld [vmem:[%s231_s20 + $0x18] sm:$0xff]  ;;  %v247_v4 = vld [vmem:[%s231_s20 + $0x20] sm:$0xff]  ;;  %v248_v5 = vld [vmem:[%s231_s20 + $0x28] sm:$0xff]  ;;  %v249_v6 = vmul.f32 %v245_v2, %v243_v0  ;;  %v255_v7 = vmul.f32 %v245_v2, %v244_v1 }
  0x12   : > { %v252_v8 = vmul.f32 %v246_v3, %v243_v0  ;;  %v258_v9 = vmul.f32 %v246_v3, %v244_v1  ;;  %v523_v15 = vld [vmem:[%s648_s17 + $0x18] sm:$0xff]  ;;  %v528_v19 = vld [vmem:[%s648_s17 + $0x40] sm:$0xff]  ;;  %v529_v20 = vld [vmem:[%s648_s17 + $0x48] sm:$0xff] }
  0x13   : > { %v250_v12 = vmul.f32 %v249_v6, %v247_v4  ;;  %v251_v13 = vmul.f32 %v249_v6, %v248_v5  ;;  %v657_v18 = vmul.f32 %v255_v7, %v247_v4  ;;  %v530_v21 = vld [vmem:[%s648_s17 + $0x50] sm:$0xff]  ;;  %v524_v24 = vld [vmem:[%s648_s17 + $0x20] sm:$0xff]  ;;  %v663_v25 = vmul.f32 %v255_v7, %v248_v5  ;;  %v531_v29 = vld [vmem:[%s648_s17 + $0x58] sm:$0xff] }
  0x14   : > { %v253_v16 = vmul.f32 %v252_v8, %v247_v4  ;;  %v254_v17 = vmul.f32 %v252_v8, %v248_v5  ;;  %v665_v26 = vmul.f32 %v258_v9, %v247_v4  ;;  %v537_v30 = vld [vmem:[%s648_s17 + $0x80] sm:$0xff]  ;;  %v525_v32 = vld [vmem:[%s648_s17 + $0x28] sm:$0xff]  ;;  %v539_v37 = vld [vmem:[%s648_s17 + $0x90] sm:$0xff]  ;;  %v260_v48 = vmul.f32 %v258_v9, %v248_v5 }
  0x15   : > { %v262_v22 = vmul.f32 %v261_v10, %v250_v12  ;;  %v265_v23 = vmul.f32 %v521_v11, %v251_v13  ;;  %v294_v33 = vmul.f32 %v528_v19, %v250_v12  ;;  %v297_v34 = vmul.f32 %v529_v20, %v251_v13  ;;  %v538_v36 = vld [vmem:[%s648_s17 + $0x88] sm:$0xff]  ;;  %v526_v39 = vld [vmem:[%s648_s17 + $0x30] sm:$0xff]  ;;  %v532_v40 = vld [vmem:[%s648_s17 + $0x60] sm:$0xff] }
  0x16   : > { %v269_v27 = vmul.f32 %v522_v14, %v253_v16  ;;  %v273_v28 = vmul.f32 %v523_v15, %v254_v17  ;;  %v301_v35 = vmul.f32 %v530_v21, %v253_v16  ;;  %v277_v38 = vmul.f32 %v524_v24, %v657_v18  ;;  %v540_v45 = vld [vmem:[%s648_s17 + $0x98] sm:$0xff]  ;;  %v546_v46 = vld [vmem:[%s648_s17 + $0xc0] sm:$0xff]  ;;  %v547_v47 = vld [vmem:[%s648_s17 + $0xc8] sm:$0xff] }
  0x17   : > { %v266_v31 = vadd.f32 %v265_v23, %v262_v22  ;;  %v298_v42 = vadd.f32 %v297_v34, %v294_v33  ;;  %v305_v43 = vmul.f32 %v531_v29, %v254_v17  ;;  %v327_v44 = vmul.f32 %v537_v30, %v250_v12  ;;  %v533_v50 = vld [vmem:[%s648_s17 + $0x68] sm:$0xff]  ;;  %v548_v53 = vld [vmem:[%s648_s17 + $0xd0] sm:$0xff]  ;;  %v541_v58 = vld [vmem:[%s648_s17 + $0xa0] sm:$0xff] }
  0x18   : > { %v281_v49 = vmul.f32 %v525_v32, %v663_v25  ;;  %v330_v51 = vmul.f32 %v538_v36, %v251_v13  ;;  %v334_v52 = vmul.f32 %v539_v37, %v253_v16  ;;  %v285_v55 = vmul.f32 %v526_v39, %v665_v26  ;;  %v549_v59 = vld [vmem:[%s648_s17 + $0xd8] sm:$0xff]  ;;  %v534_v61 = vld [vmem:[%s648_s17 + $0x70] sm:$0xff]  ;;  %v542_v5 = vld [vmem:[%s648_s17 + $0xa8] sm:$0xff] }
  0x19   : > { %v270_v41 = vadd.f32 %v269_v27, %v266_v31  ;;  %v302_v56 = vadd.f32 %v301_v35, %v298_v42  ;;  %v309_v57 = vmul.f32 %v532_v40, %v657_v18  ;;  %v527_v60 = vld [vmem:[%s648_s17 + $0x38] sm:$0xff]  ;;  %v338_v63 = vmul.f32 %v540_v45, %v254_v17  ;;  %v550_v7 = vld [vmem:[%s648_s17 + $0xe0] sm:$0xff]  ;;  %v543_v20 = vld [vmem:[%s648_s17 + $0xb0] sm:$0xff] }
  0x1a   : > { %v331_v62 = vadd.f32 %v330_v51, %v327_v44  ;;  %v360_v0 = vmul.f32 %v546_v46, %v250_v12  ;;  %v363_v1 = vmul.f32 %v547_v47, %v251_v13  ;;  %v313_v4 = vmul.f32 %v533_v50, %v663_v25  ;;  %v535_v8 = vld [vmem:[%s648_s17 + $0x78] sm:$0xff]  ;;  %v551_v21 = vld [vmem:[%s648_s17 + $0xe8] sm:$0xff]  ;;  %v552_v30 = vld [vmem:[%s648_s17 + $0xf0] sm:$0xff] }
  0x1b   : > { %v274_v54 = vadd.f32 %v273_v28, %v270_v41  ;;  %v306_v3 = vadd.f32 %v305_v43, %v302_v56  ;;  %v367_v6 = vmul.f32 %v548_v53, %v253_v16  ;;  %v342_v10 = vmul.f32 %v541_v58, %v657_v18  ;;  %v553_v37 = vld [vmem:[%s648_s17 + $0xf8] sm:$0xff] }
  0x1c   : > { %v335_v9 = vadd.f32 %v334_v52, %v331_v62  ;;  %v364_v11 = vadd.f32 %v363_v1, %v360_v0  ;;  %v371_v14 = vmul.f32 %v549_v59, %v254_v17  ;;  %v289_v13 = vmul.f32 %v527_v60, %v260_v48  ;;  %v544_v17 = vld [vmem:[%s648_s17 + $0xb8] sm:$0xff] }
  0x1d   : > { %v278_v2 = vadd.f32 %v277_v38, %v274_v54  ;;  %v310_v15 = vadd.f32 %v309_v57, %v306_v3  ;;  %v317_v19 = vmul.f32 %v534_v61, %v665_v26  ;;  %v346_v16 = vmul.f32 %v542_v5, %v663_v25 }
  0x1e   : > { %v339_v22 = vadd.f32 %v338_v63, %v335_v9  ;;  %v368_v23 = vadd.f32 %v367_v6, %v364_v11  ;;  %v375_v24 = vmul.f32 %v550_v7, %v657_v18  ;;  %v321_v29 = vmul.f32 %v535_v8, %v260_v48 }
  0x1f   : > { %v282_v12 = vadd.f32 %v281_v49, %v278_v2  ;;  %v314_v28 = vadd.f32 %v313_v4, %v310_v15  ;;  %v350_v32 = vmul.f32 %v543_v20, %v665_v26  ;;  %v379_v34 = vmul.f32 %v551_v21, %v663_v25 }
  0x20   : > { %v343_v31 = vadd.f32 %v342_v10, %v339_v22  ;;  %v372_v33 = vadd.f32 %v371_v14, %v368_v23  ;;  %v354_v18 = vmul.f32 %v544_v17, %v260_v48  ;;  %v383_v40 = vmul.f32 %v552_v30, %v665_v26 }
  0x21   : > { %v286_v27 = vadd.f32 %v285_v55, %v282_v12  ;;  %v318_v36 = vadd.f32 %v317_v19, %v314_v28  ;;  %v387_v44 = vmul.f32 %v553_v37, %v260_v48 }
  0x22   : > { %v347_v38 = vadd.f32 %v346_v16, %v343_v31  ;;  %v376_v39 = vadd.f32 %v375_v24, %v372_v33 }
  0x23   : > { %v290_v35 = vadd.f32 %v289_v13, %v286_v27  ;;  %v322_v41 = vadd.f32 %v321_v29, %v318_v36 }
  0x24   : > { %v351_v42 = vadd.f32 %v350_v32, %v347_v38  ;;  %v380_v43 = vadd.f32 %v379_v34, %v376_v39 }
  0x25   : > { %291 = vst [vmem:[%s242_s24] sm:$0xff] %v290_v35  ;;  %536 = vst [vmem:[%s242_s24 + $0x8] sm:$0xff] %v322_v41 }
  0x26   : > { %v355_v45 = vadd.f32 %v354_v18, %v351_v42  ;;  %v384_v46 = vadd.f32 %v383_v40, %v380_v43 }
  0x28   : > { %545 = vst [vmem:[%s242_s24 + $0x10] sm:$0xff] %v355_v45  ;;  %v388_v47 = vadd.f32 %v387_v44, %v384_v46 }
  0x2a   : > { %554 = vst [vmem:[%s242_s24 + $0x18] sm:$0xff] %v388_v47 }
  0x2b PF: > { %s12_s11 = sadd.s32 1, %s606_s11   ;;  %s719_s9 = smov %s602_s10 }
  0x2c   : > { %p9_p5 = scmp.ge.s32.totalorder %s12_s11, 4   ;;  %s720_s10 = smov %s722_s12 }
  0x2e   :  { %11 = sbr.rel (!%p9_p5) target bundleno = 2 (0x2), region = 95 }

</bundles_post_ra>
